<compile_context>
chip_gen: v5e
topology: v5e:2x2
jax: 0.10.0
libtpu: 0.0.40
codegen_flags: <defaults>
</compile_context>

<pallas_src>
import functools

import jax
import jax.numpy as jnp
from jax.experimental import pallas as pl
from jax.experimental.pallas import tpu as pltpu


# ----------------------------- fused Pallas kernel -----------------------------

def _make_fused_kernel(conv_widths, k):
    """Builds the fused forward kernel.

    conv_widths: output width of each GCN layer, e.g. (32, 32, 1).
    k:           SortAggregation k.
    """
    num_convs = len(conv_widths)
    offsets = []
    off = 0
    for w in conv_widths:
        offsets.append(off)
        off += w
    kh = k // 2  # MaxPool1d(2, 2) output length (floor, matches PyTorch)

    def kernel(adj_ref, x_ref, *refs):
        f32 = jnp.float32
        conv_refs = refs[:2 * num_convs]
        (wc1_ref, bc1_ref, wc2_ref, bc2_ref,
         wf1_ref, bf1_ref, wf2_ref, bf2_ref, o_ref) = refs[2 * num_convs:]

        adj = adj_ref[0]                                   # (N, N)  raw adjacency
        N = adj.shape[0]

        ridx = jax.lax.broadcasted_iota(jnp.int32, (N, N), 0)
        cidx = jax.lax.broadcasted_iota(jnp.int32, (N, N), 1)
        eye = (ridx == cidx).astype(f32)

        # --- GCN normalization  D^-1/2 (A + I) D^-1/2, fused in-kernel ---
        a_hat = adj + eye
        deg = jnp.sum(a_hat, axis=1, keepdims=True)        # (N, 1) row degree
        d_inv = jax.lax.rsqrt(jnp.maximum(deg, 1e-12))     # (N, 1)
        # lane-oriented copy of d_inv (diagonal mask + sublane reduce; no transpose)
        d_inv_t = jnp.sum(eye * d_inv, axis=0, keepdims=True)   # (1, N)
        a_norm = a_hat * d_inv * d_inv_t                   # (N, N)

        # --- GCN stack: h_i = tanh(A_norm @ (h_{i-1} @ W_i) + b_i) ---
        hs = []
        h = x_ref[0]                                       # (N, F)
        for i in range(num_convs):
            w = conv_refs[2 * i][...]
            b = conv_refs[2 * i + 1][...]
            xw = jnp.dot(h, w, preferred_element_type=f32)
            h = jnp.tanh(jnp.dot(a_norm, xw, preferred_element_type=f32) + b)
            hs.append(h)

        # --- SortAggregation(k): stable descending rank by the LAST channel ---
        key = hs[-1]                                       # (N, 1)
        key_t = jnp.sum(eye * key, axis=0, keepdims=True)  # (1, N) lane-oriented copy
        # before[a, b] == node a precedes node b (stable descending order)
        before = (key > key_t) | ((key == key_t) & (ridx < cidx))
        rank = jnp.sum(before.astype(jnp.int32), axis=0, keepdims=True)   # (1, N)

        # one-hot selectors for the even/odd sorted positions (fused top-k gather
        # + MaxPool pairing); rows with rank >= N never fire -> zero padding,
        # matching SortAggregation's zero-fill when a graph has < k nodes.
        p_idx = jax.lax.broadcasted_iota(jnp.int32, (kh, N), 0)
        sel_even = (rank == 2 * p_idx).astype(f32)         # (kh, N)
        sel_odd = (rank == 2 * p_idx + 1).astype(f32)      # (kh, N)

        # --- Conv1d(1, C1, D, stride=D) folded over the (never materialized)
        #     concat(xs):  xw1[n, :] = cat(hs)[n, :] @ W_conv1 ---
        wc1 = wc1_ref[...]                                 # (D, C1)
        C1 = wc1.shape[1]
        xw1 = None
        for i, width in enumerate(conv_widths):
            w_slice = wc1[offsets[i]:offsets[i] + width, :]
            if width == 1:
                term = hs[i] * w_slice                     # (N,1)*(1,C1) rank-1, VPU
            else:
                term = jnp.dot(hs[i], w_slice, preferred_element_type=f32)
            xw1 = term if xw1 is None else xw1 + term      # (N, C1)

        # fused ReLU + MaxPool1d(2, 2): gather even/odd sorted nodes via matmul
        bc1 = bc1_ref[...]
        c1_even = jnp.maximum(
            jnp.dot(sel_even, xw1, preferred_element_type=f32) + bc1, 0.0)
        c1_odd = jnp.maximum(
            jnp.dot(sel_odd, xw1, preferred_element_type=f32) + bc1, 0.0)
        pooled = jnp.maximum(c1_even, c1_odd)              # (kh, C1)

        # --- Conv1d(C1, C2, K, 1) + ReLU: accumulate K shifted small dots
        #     (in-kernel im2col, nothing materialized) ---
        wc2 = wc2_ref[...]                                 # (K*C1, C2), (dt, ci)-major
        bc2 = bc2_ref[...]
        C2 = wc2.shape[1]
        K = wc2.shape[0] // C1
        t_out = kh - K + 1
        acc = None
        for dt in range(K):
            part = jnp.dot(pooled[dt:dt + t_out, :],
                           wc2[dt * C1:(dt + 1) * C1, :],
                           preferred_element_type=f32)
            acc = part if acc is None else acc + part
        h_c2 = jnp.maximum(acc + bc2, 0.0)                 # (t_out, C2)

        # --- MLP. fc1 consumes the PyTorch channel-major flatten via a
        #     pre-permuted (t_out, C2, F1) weight -> no transpose/reshape. ---
        wf1 = wf1_ref[...]                                 # (t_out, C2, F1)
        z = None
        for t in range(t_out):
            part = jnp.dot(h_c2[t:t + 1, :], wf1[t], preferred_element_type=f32)
            z = part if z is None else z + part
        z = jnp.maximum(z + bf1_ref[...], 0.0)             # (1, F1)
        # TODO(synk): MLP dropout(p=0.5) omitted (eval-mode / deterministic inference).
        o_ref[0] = (jnp.dot(z, wf2_ref[...], preferred_element_type=f32)
                    + bf2_ref[...])                        # (1, num_classes)

    return kernel


# ----------------------------- wrapper / params -----------------------------

def _batch_index_map(nd):
    return lambda b: (b,) + (0,) * (nd - 1)


def _const_index_map(nd):
    return lambda b: (0,) * nd


def gnns_forward(params, adj, x):
    """Fused forward. adj: raw symmetric adjacency (no self loops), x: node feats."""
    B, N, _ = x.shape
    k = int(params["k"])
    convs = params["convs"]
    conv_widths = tuple(w.shape[1] for (w, _) in convs)
    assert sum(conv_widths) == params["w_conv1"].shape[0]

    C2, C1, K = params["w_conv2"].shape
    # Conv1d(C1, C2, K) weight [Cout, Cin, K] -> im2col layout [(dt, ci), Cout].
    wc2r = jnp.transpose(params["w_conv2"], (2, 1, 0)).reshape(K * C1, C2)
    # fc1 weight: PyTorch flattens [B, C2, T] channel-major (row = c*T + t);
    # reorder rows so the kernel can consume the NWC (t, c) activation layout.
    dense_dim, F1 = params["w_fc1"].shape
    t_out = dense_dim // C2
    wf1_r = jnp.transpose(params["w_fc1"].reshape(C2, t_out, F1), (1, 0, 2))

    num_classes = params["w_fc2"].shape[1]

    conv_args = []
    for (w, b) in convs:
        conv_args += [w, b]
    inputs = [adj, x] + conv_args + [
        params["w_conv1"], params["b_conv1"],
        wc2r, params["b_conv2"],
        wf1_r, params["b_fc1"],
        params["w_fc2"], params["b_fc2"],
    ]

    in_specs = [
        pl.BlockSpec((1,) + adj.shape[1:], _batch_index_map(adj.ndim)),
        pl.BlockSpec((1,) + x.shape[1:], _batch_index_map(x.ndim)),
    ] + [pl.BlockSpec(a.shape, _const_index_map(a.ndim)) for a in inputs[2:]]

    kernel = _make_fused_kernel(conv_widths, k)

    out = pl.pallas_call(
        kernel,
        out_shape=jax.ShapeDtypeStruct((B, 1, num_classes), jnp.float32),
        grid=(B,),
        in_specs=in_specs,
        out_specs=pl.BlockSpec((1, 1, num_classes), lambda b: (b, 0, 0)),
        compiler_params=pltpu.CompilerParams(
            dimension_semantics=("parallel",)),
    )(*inputs)
    return out[:, 0, :]


def init_params(key, num_features, hidden, num_layers, num_classes, k):
    conv1d_channels = (16, 32)
    total_latent_dim = hidden * num_layers + 1
    conv1d_kws = (total_latent_dim, 5)
    dense_dim = int((k - 2) / 2 + 1)
    dense_dim = (dense_dim - conv1d_kws[1] + 1) * conv1d_channels[1]

    def dense(key, fin, fout, scale=0.1):
        return scale * jax.random.normal(key, (fin, fout), jnp.float32)

    keys = jax.random.split(key, 16)
    # GCN stack: num_features->H, (num_layers-1) x H->H, H->1
    conv_dims = ([(num_features, hidden)] +
                 [(hidden, hidden)] * (num_layers - 1) +
                 [(hidden, 1)])
    convs = []
    for i, (fin, fout) in enumerate(conv_dims):
        convs.append((dense(keys[i], fin, fout),
                      jnp.zeros((1, fout), jnp.float32)))

    return {
        "k": int(k),
        "total_latent_dim": total_latent_dim,
        "convs": convs,
        # Conv1d(1, 16, D, D): PyTorch weight [16,1,D]; stored here as [D,16].
        "w_conv1": dense(keys[8], total_latent_dim, conv1d_channels[0]),
        "b_conv1": jnp.zeros((1, conv1d_channels[0]), jnp.float32),
        # Conv1d(16, 32, 5, 1): PyTorch layout [Cout, Cin, K].
        "w_conv2": 0.1 * jax.random.normal(
            keys[9], (conv1d_channels[1], conv1d_channels[0], conv1d_kws[1]),
            jnp.float32),
        "b_conv2": jnp.zeros((1, conv1d_channels[1]), jnp.float32),
        # MLP([dense_dim, 32, num_classes])
        "w_fc1": dense(keys[10], dense_dim, 32),
        "b_fc1": jnp.zeros((1, 32), jnp.float32),
        "w_fc2": dense(keys[11], 32, num_classes),
        "b_fc2": jnp.zeros((1, num_classes), jnp.float32),
    }


if __name__ == "__main__":
    B, N = 2, 20               # graphs, nodes per graph
    num_features = 8
    hidden = 32
    num_layers = 2
    num_classes = 3
    k = 16                     # SortAggregation k (synthetic choice, >= 10)

    key = jax.random.PRNGKey(0)
    k_x, k_a, k_p = jax.random.split(key, 3)

    x = jax.random.normal(k_x, (B, N, num_features), jnp.float32)
    rand_adj = jax.random.bernoulli(k_a, 0.3, (B, N, N)).astype(jnp.float32)
    adj = jnp.maximum(rand_adj, jnp.transpose(rand_adj, (0, 2, 1)))
    adj = adj * (1.0 - jnp.eye(N, dtype=jnp.float32)[None])   # no self loops yet

    params = init_params(k_p, num_features, hidden, num_layers, num_classes, k)

    fwd = jax.jit(functools.partial(gnns_forward, params))
    out = fwd(adj, x)
    out = jax.block_until_ready(out)

    assert out.shape == (B, num_classes), out.shape
    assert bool(jnp.all(jnp.isfinite(out)))
    print("KERNEL_OK")
</pallas_src>

<mosaic_0001>
module attributes {stable_mosaic.version = 11 : i64} {
  func.func @kernel(%arg0: i32, %arg1: memref<1x20x20xf32, #tpu.memory_space<vmem>>, %arg2: memref<1x20x8xf32, #tpu.memory_space<vmem>>, %arg3: memref<8x32xf32, #tpu.memory_space<vmem>>, %arg4: memref<1x32xf32, #tpu.memory_space<vmem>>, %arg5: memref<32x32xf32, #tpu.memory_space<vmem>>, %arg6: memref<1x32xf32, #tpu.memory_space<vmem>>, %arg7: memref<32x1xf32, #tpu.memory_space<vmem>>, %arg8: memref<1x1xf32, #tpu.memory_space<vmem>>, %arg9: memref<65x16xf32, #tpu.memory_space<vmem>>, %arg10: memref<1x16xf32, #tpu.memory_space<vmem>>, %arg11: memref<80x32xf32, #tpu.memory_space<vmem>>, %arg12: memref<1x32xf32, #tpu.memory_space<vmem>>, %arg13: memref<4x32x32xf32, #tpu.memory_space<vmem>>, %arg14: memref<1x32xf32, #tpu.memory_space<vmem>>, %arg15: memref<32x3xf32, #tpu.memory_space<vmem>>, %arg16: memref<1x3xf32, #tpu.memory_space<vmem>>, %arg17: memref<1x1x3xf32, #tpu.memory_space<vmem>>) attributes {dimension_semantics = [#tpu.dimension_semantics<parallel>], iteration_bounds = array<i64: 2>, scalar_prefetch = 0 : i64, scratch_operands = 0 : i64, tpu.core_type = #tpu.core_type<tc>, window_params = [{transform_indices = @transform_0, window_bounds = array<i64: 1, 20, 20>}, {transform_indices = @transform_1, window_bounds = array<i64: 1, 20, 8>}, {pipeline_mode = #tpu.pipeline_mode<synchronous>, transform_indices = @transform_2, window_bounds = array<i64: 8, 32>}, {pipeline_mode = #tpu.pipeline_mode<synchronous>, transform_indices = @transform_3, window_bounds = array<i64: 1, 32>}, {pipeline_mode = #tpu.pipeline_mode<synchronous>, transform_indices = @transform_4, window_bounds = array<i64: 32, 32>}, {pipeline_mode = #tpu.pipeline_mode<synchronous>, transform_indices = @transform_5, window_bounds = array<i64: 1, 32>}, {pipeline_mode = #tpu.pipeline_mode<synchronous>, transform_indices = @transform_6, window_bounds = array<i64: 32, 1>}, {pipeline_mode = #tpu.pipeline_mode<synchronous>, transform_indices = @transform_7, window_bounds = array<i64: 1, 1>}, {pipeline_mode = #tpu.pipeline_mode<synchronous>, transform_indices = @transform_8, window_bounds = array<i64: 65, 16>}, {pipeline_mode = #tpu.pipeline_mode<synchronous>, transform_indices = @transform_9, window_bounds = array<i64: 1, 16>}, {pipeline_mode = #tpu.pipeline_mode<synchronous>, transform_indices = @transform_10, window_bounds = array<i64: 80, 32>}, {pipeline_mode = #tpu.pipeline_mode<synchronous>, transform_indices = @transform_11, window_bounds = array<i64: 1, 32>}, {pipeline_mode = #tpu.pipeline_mode<synchronous>, transform_indices = @transform_12, window_bounds = array<i64: 4, 32, 32>}, {pipeline_mode = #tpu.pipeline_mode<synchronous>, transform_indices = @transform_13, window_bounds = array<i64: 1, 32>}, {pipeline_mode = #tpu.pipeline_mode<synchronous>, transform_indices = @transform_14, window_bounds = array<i64: 32, 3>}, {pipeline_mode = #tpu.pipeline_mode<synchronous>, transform_indices = @transform_15, window_bounds = array<i64: 1, 3>}, {transform_indices = @transform_16, window_bounds = array<i64: 1, 1, 3>}]} {
    %c0 = arith.constant 0 : index
    %c0_0 = arith.constant 0 : index
    %c0_1 = arith.constant 0 : index
    %0 = vector.load %arg1[%c0, %c0_0, %c0_1] : memref<1x20x20xf32, #tpu.memory_space<vmem>>, vector<1x20x20xf32>
    %1 = vector.shape_cast %0 : vector<1x20x20xf32> to vector<20x20xf32>
    %2 = tpu.iota {dimensions = array<i32: 0>} : vector<20x20xi32>
    %3 = tpu.iota {dimensions = array<i32: 1>} : vector<20x20xi32>
    %4 = arith.cmpi eq, %2, %3 : vector<20x20xi32>
    %5 = arith.extui %4 : vector<20x20xi1> to vector<20x20xi32>
    %6 = arith.sitofp %5 : vector<20x20xi32> to vector<20x20xf32>
    %7 = arith.addf %1, %6 : vector<20x20xf32>
    %cst = arith.constant dense<0.000000e+00> : vector<20xf32>
    %8 = vector.multi_reduction <add>, %7, %cst [1] : vector<20x20xf32> to vector<20xf32>
    %9 = vector.shape_cast %8 : vector<20xf32> to vector<20x1xf32>
    %cst_2 = arith.constant 9.99999996E-13 : f32
    %10 = vector.broadcast %cst_2 : f32 to vector<20x1xf32>
    %11 = arith.maximumf %9, %10 : vector<20x1xf32>
    %12 = math.rsqrt %11 : vector<20x1xf32>
    %13 = vector.broadcast %12 : vector<20x1xf32> to vector<20x20xf32>
    %14 = arith.mulf %6, %13 : vector<20x20xf32>
    %cst_3 = arith.constant dense<0.000000e+00> : vector<20xf32>
    %15 = vector.multi_reduction <add>, %14, %cst_3 [0] : vector<20x20xf32> to vector<20xf32>
    %16 = vector.shape_cast %15 : vector<20xf32> to vector<1x20xf32>
    %17 = vector.broadcast %12 : vector<20x1xf32> to vector<20x20xf32>
    %18 = arith.mulf %7, %17 : vector<20x20xf32>
    %19 = vector.broadcast %16 : vector<1x20xf32> to vector<20x20xf32>
    %20 = arith.mulf %18, %19 : vector<20x20xf32>
    %c0_4 = arith.constant 0 : index
    %c0_5 = arith.constant 0 : index
    %c0_6 = arith.constant 0 : index
    %21 = vector.load %arg2[%c0_4, %c0_5, %c0_6] : memref<1x20x8xf32, #tpu.memory_space<vmem>>, vector<1x20x8xf32>
    %22 = vector.shape_cast %21 : vector<1x20x8xf32> to vector<20x8xf32>
    %c0_7 = arith.constant 0 : index
    %c0_8 = arith.constant 0 : index
    %23 = vector.load %arg3[%c0_7, %c0_8] : memref<8x32xf32, #tpu.memory_space<vmem>>, vector<8x32xf32>
    %c0_9 = arith.constant 0 : index
    %c0_10 = arith.constant 0 : index
    %24 = vector.load %arg4[%c0_9, %c0_10] : memref<1x32xf32, #tpu.memory_space<vmem>>, vector<1x32xf32>
    %cst_11 = arith.constant dense<0.000000e+00> : vector<20x32xf32>
    %25 = tpu.matmul %22, %23, %cst_11 {dimension_numbers = #tpu.dot_dimension_numbers<[1], [0], [0], [1], [0, 0, 1, 1], [], []>} : vector<20x8xf32>, vector<8x32xf32>, vector<20x32xf32> -> vector<20x32xf32>
    %cst_12 = arith.constant dense<0.000000e+00> : vector<20x32xf32>
    %26 = tpu.matmul %20, %25, %cst_12 {dimension_numbers = #tpu.dot_dimension_numbers<[1], [0], [0], [1], [0, 0, 1, 1], [], []>} : vector<20x20xf32>, vector<20x32xf32>, vector<20x32xf32> -> vector<20x32xf32>
    %27 = vector.broadcast %24 : vector<1x32xf32> to vector<20x32xf32>
    %28 = arith.addf %26, %27 : vector<20x32xf32>
    %29 = math.tanh %28 : vector<20x32xf32>
    %c0_13 = arith.constant 0 : index
    %c0_14 = arith.constant 0 : index
    %30 = vector.load %arg5[%c0_13, %c0_14] : memref<32x32xf32, #tpu.memory_space<vmem>>, vector<32x32xf32>
    %c0_15 = arith.constant 0 : index
    %c0_16 = arith.constant 0 : index
    %31 = vector.load %arg6[%c0_15, %c0_16] : memref<1x32xf32, #tpu.memory_space<vmem>>, vector<1x32xf32>
    %cst_17 = arith.constant dense<0.000000e+00> : vector<20x32xf32>
    %32 = tpu.matmul %29, %30, %cst_17 {dimension_numbers = #tpu.dot_dimension_numbers<[1], [0], [0], [1], [0, 0, 1, 1], [], []>} : vector<20x32xf32>, vector<32x32xf32>, vector<20x32xf32> -> vector<20x32xf32>
    %cst_18 = arith.constant dense<0.000000e+00> : vector<20x32xf32>
    %33 = tpu.matmul %20, %32, %cst_18 {dimension_numbers = #tpu.dot_dimension_numbers<[1], [0], [0], [1], [0, 0, 1, 1], [], []>} : vector<20x20xf32>, vector<20x32xf32>, vector<20x32xf32> -> vector<20x32xf32>
    %34 = vector.broadcast %31 : vector<1x32xf32> to vector<20x32xf32>
    %35 = arith.addf %33, %34 : vector<20x32xf32>
    %36 = math.tanh %35 : vector<20x32xf32>
    %c0_19 = arith.constant 0 : index
    %c0_20 = arith.constant 0 : index
    %37 = vector.load %arg7[%c0_19, %c0_20] : memref<32x1xf32, #tpu.memory_space<vmem>>, vector<32x1xf32>
    %c0_21 = arith.constant 0 : index
    %c0_22 = arith.constant 0 : index
    %38 = vector.load %arg8[%c0_21, %c0_22] : memref<1x1xf32, #tpu.memory_space<vmem>>, vector<1x1xf32>
    %cst_23 = arith.constant dense<0.000000e+00> : vector<20x1xf32>
    %39 = tpu.matmul %36, %37, %cst_23 {dimension_numbers = #tpu.dot_dimension_numbers<[1], [0], [0], [1], [0, 0, 1, 1], [], []>} : vector<20x32xf32>, vector<32x1xf32>, vector<20x1xf32> -> vector<20x1xf32>
    %cst_24 = arith.constant dense<0.000000e+00> : vector<20x1xf32>
    %40 = tpu.matmul %20, %39, %cst_24 {dimension_numbers = #tpu.dot_dimension_numbers<[1], [0], [0], [1], [0, 0, 1, 1], [], []>} : vector<20x20xf32>, vector<20x1xf32>, vector<20x1xf32> -> vector<20x1xf32>
    %41 = vector.broadcast %38 : vector<1x1xf32> to vector<20x1xf32>
    %42 = arith.addf %40, %41 : vector<20x1xf32>
    %43 = math.tanh %42 : vector<20x1xf32>
    %44 = vector.broadcast %43 : vector<20x1xf32> to vector<20x20xf32>
    %45 = arith.mulf %6, %44 : vector<20x20xf32>
    %cst_25 = arith.constant dense<0.000000e+00> : vector<20xf32>
    %46 = vector.multi_reduction <add>, %45, %cst_25 [0] : vector<20x20xf32> to vector<20xf32>
    %47 = vector.shape_cast %46 : vector<20xf32> to vector<1x20xf32>
    %48 = vector.broadcast %43 : vector<20x1xf32> to vector<20x20xf32>
    %49 = vector.broadcast %47 : vector<1x20xf32> to vector<20x20xf32>
    %50 = arith.cmpf ogt, %48, %49 : vector<20x20xf32>
    %51 = vector.broadcast %43 : vector<20x1xf32> to vector<20x20xf32>
    %52 = vector.broadcast %47 : vector<1x20xf32> to vector<20x20xf32>
    %53 = arith.cmpf oeq, %51, %52 : vector<20x20xf32>
    %54 = arith.cmpi slt, %2, %3 : vector<20x20xi32>
    %55 = arith.andi %53, %54 : vector<20x20xi1>
    %56 = arith.ori %50, %55 : vector<20x20xi1>
    %57 = arith.extui %56 : vector<20x20xi1> to vector<20x20xi32>
    %cst_26 = arith.constant dense<0> : vector<20xi32>
    %58 = vector.multi_reduction <add>, %57, %cst_26 [0] : vector<20x20xi32> to vector<20xi32>
    %59 = vector.shape_cast %58 : vector<20xi32> to vector<1x20xi32>
    %60 = tpu.iota {dimensions = array<i32: 0>} : vector<8x20xi32>
    %c2_i32 = arith.constant 2 : i32
    %61 = vector.broadcast %c2_i32 : i32 to vector<8x20xi32>
    %62 = arith.muli %61, %60 : vector<8x20xi32>
    %63 = vector.broadcast %59 : vector<1x20xi32> to vector<8x20xi32>
    %64 = arith.cmpi eq, %63, %62 : vector<8x20xi32>
    %65 = arith.extui %64 : vector<8x20xi1> to vector<8x20xi32>
    %66 = arith.sitofp %65 : vector<8x20xi32> to vector<8x20xf32>
    %c2_i32_27 = arith.constant 2 : i32
    %67 = vector.broadcast %c2_i32_27 : i32 to vector<8x20xi32>
    %68 = arith.muli %67, %60 : vector<8x20xi32>
    %c1_i32 = arith.constant 1 : i32
    %69 = vector.broadcast %c1_i32 : i32 to vector<8x20xi32>
    %70 = arith.addi %68, %69 : vector<8x20xi32>
    %71 = vector.broadcast %59 : vector<1x20xi32> to vector<8x20xi32>
    %72 = arith.cmpi eq, %71, %70 : vector<8x20xi32>
    %73 = arith.extui %72 : vector<8x20xi1> to vector<8x20xi32>
    %74 = arith.sitofp %73 : vector<8x20xi32> to vector<8x20xf32>
    %c0_28 = arith.constant 0 : index
    %c0_29 = arith.constant 0 : index
    %75 = vector.load %arg9[%c0_28, %c0_29] : memref<65x16xf32, #tpu.memory_space<vmem>>, vector<65x16xf32>
    %76 = vector.extract_strided_slice %75 {offsets = [0, 0], sizes = [32, 16], strides = [1, 1]} : vector<65x16xf32> to vector<32x16xf32>
    %cst_30 = arith.constant dense<0.000000e+00> : vector<20x16xf32>
    %77 = tpu.matmul %29, %76, %cst_30 {dimension_numbers = #tpu.dot_dimension_numbers<[1], [0], [0], [1], [0, 0, 1, 1], [], []>} : vector<20x32xf32>, vector<32x16xf32>, vector<20x16xf32> -> vector<20x16xf32>
    %78 = vector.extract_strided_slice %75 {offsets = [32, 0], sizes = [32, 16], strides = [1, 1]} : vector<65x16xf32> to vector<32x16xf32>
    %cst_31 = arith.constant dense<0.000000e+00> : vector<20x16xf32>
    %79 = tpu.matmul %36, %78, %cst_31 {dimension_numbers = #tpu.dot_dimension_numbers<[1], [0], [0], [1], [0, 0, 1, 1], [], []>} : vector<20x32xf32>, vector<32x16xf32>, vector<20x16xf32> -> vector<20x16xf32>
    %80 = arith.addf %77, %79 : vector<20x16xf32>
    %81 = vector.extract_strided_slice %75 {offsets = [64, 0], sizes = [1, 16], strides = [1, 1]} : vector<65x16xf32> to vector<1x16xf32>
    %82 = vector.broadcast %43 : vector<20x1xf32> to vector<20x16xf32>
    %83 = vector.broadcast %81 : vector<1x16xf32> to vector<20x16xf32>
    %84 = arith.mulf %82, %83 : vector<20x16xf32>
    %85 = arith.addf %80, %84 : vector<20x16xf32>
    %c0_32 = arith.constant 0 : index
    %c0_33 = arith.constant 0 : index
    %86 = vector.load %arg10[%c0_32, %c0_33] : memref<1x16xf32, #tpu.memory_space<vmem>>, vector<1x16xf32>
    %cst_34 = arith.constant dense<0.000000e+00> : vector<8x16xf32>
    %87 = tpu.matmul %66, %85, %cst_34 {dimension_numbers = #tpu.dot_dimension_numbers<[1], [0], [0], [1], [0, 0, 1, 1], [], []>} : vector<8x20xf32>, vector<20x16xf32>, vector<8x16xf32> -> vector<8x16xf32>
    %88 = vector.broadcast %86 : vector<1x16xf32> to vector<8x16xf32>
    %89 = arith.addf %87, %88 : vector<8x16xf32>
    %cst_35 = arith.constant 0.000000e+00 : f32
    %90 = vector.broadcast %cst_35 : f32 to vector<8x16xf32>
    %91 = arith.maximumf %89, %90 : vector<8x16xf32>
    %cst_36 = arith.constant dense<0.000000e+00> : vector<8x16xf32>
    %92 = tpu.matmul %74, %85, %cst_36 {dimension_numbers = #tpu.dot_dimension_numbers<[1], [0], [0], [1], [0, 0, 1, 1], [], []>} : vector<8x20xf32>, vector<20x16xf32>, vector<8x16xf32> -> vector<8x16xf32>
    %93 = vector.broadcast %86 : vector<1x16xf32> to vector<8x16xf32>
    %94 = arith.addf %92, %93 : vector<8x16xf32>
    %cst_37 = arith.constant 0.000000e+00 : f32
    %95 = vector.broadcast %cst_37 : f32 to vector<8x16xf32>
    %96 = arith.maximumf %94, %95 : vector<8x16xf32>
    %97 = arith.maximumf %91, %96 : vector<8x16xf32>
    %c0_38 = arith.constant 0 : index
    %c0_39 = arith.constant 0 : index
    %98 = vector.load %arg11[%c0_38, %c0_39] : memref<80x32xf32, #tpu.memory_space<vmem>>, vector<80x32xf32>
    %c0_40 = arith.constant 0 : index
    %c0_41 = arith.constant 0 : index
    %99 = vector.load %arg12[%c0_40, %c0_41] : memref<1x32xf32, #tpu.memory_space<vmem>>, vector<1x32xf32>
    %100 = vector.extract_strided_slice %97 {offsets = [0, 0], sizes = [4, 16], strides = [1, 1]} : vector<8x16xf32> to vector<4x16xf32>
    %101 = vector.extract_strided_slice %98 {offsets = [0, 0], sizes = [16, 32], strides = [1, 1]} : vector<80x32xf32> to vector<16x32xf32>
    %cst_42 = arith.constant dense<0.000000e+00> : vector<4x32xf32>
    %102 = tpu.matmul %100, %101, %cst_42 {dimension_numbers = #tpu.dot_dimension_numbers<[1], [0], [0], [1], [0, 0, 1, 1], [], []>} : vector<4x16xf32>, vector<16x32xf32>, vector<4x32xf32> -> vector<4x32xf32>
    %103 = vector.extract_strided_slice %97 {offsets = [1, 0], sizes = [4, 16], strides = [1, 1]} : vector<8x16xf32> to vector<4x16xf32>
    %104 = vector.extract_strided_slice %98 {offsets = [16, 0], sizes = [16, 32], strides = [1, 1]} : vector<80x32xf32> to vector<16x32xf32>
    %cst_43 = arith.constant dense<0.000000e+00> : vector<4x32xf32>
    %105 = tpu.matmul %103, %104, %cst_43 {dimension_numbers = #tpu.dot_dimension_numbers<[1], [0], [0], [1], [0, 0, 1, 1], [], []>} : vector<4x16xf32>, vector<16x32xf32>, vector<4x32xf32> -> vector<4x32xf32>
    %106 = arith.addf %102, %105 : vector<4x32xf32>
    %107 = vector.extract_strided_slice %97 {offsets = [2, 0], sizes = [4, 16], strides = [1, 1]} : vector<8x16xf32> to vector<4x16xf32>
    %108 = vector.extract_strided_slice %98 {offsets = [32, 0], sizes = [16, 32], strides = [1, 1]} : vector<80x32xf32> to vector<16x32xf32>
    %cst_44 = arith.constant dense<0.000000e+00> : vector<4x32xf32>
    %109 = tpu.matmul %107, %108, %cst_44 {dimension_numbers = #tpu.dot_dimension_numbers<[1], [0], [0], [1], [0, 0, 1, 1], [], []>} : vector<4x16xf32>, vector<16x32xf32>, vector<4x32xf32> -> vector<4x32xf32>
    %110 = arith.addf %106, %109 : vector<4x32xf32>
    %111 = vector.extract_strided_slice %97 {offsets = [3, 0], sizes = [4, 16], strides = [1, 1]} : vector<8x16xf32> to vector<4x16xf32>
    %112 = vector.extract_strided_slice %98 {offsets = [48, 0], sizes = [16, 32], strides = [1, 1]} : vector<80x32xf32> to vector<16x32xf32>
    %cst_45 = arith.constant dense<0.000000e+00> : vector<4x32xf32>
    %113 = tpu.matmul %111, %112, %cst_45 {dimension_numbers = #tpu.dot_dimension_numbers<[1], [0], [0], [1], [0, 0, 1, 1], [], []>} : vector<4x16xf32>, vector<16x32xf32>, vector<4x32xf32> -> vector<4x32xf32>
    %114 = arith.addf %110, %113 : vector<4x32xf32>
    %115 = vector.extract_strided_slice %97 {offsets = [4, 0], sizes = [4, 16], strides = [1, 1]} : vector<8x16xf32> to vector<4x16xf32>
    %116 = vector.extract_strided_slice %98 {offsets = [64, 0], sizes = [16, 32], strides = [1, 1]} : vector<80x32xf32> to vector<16x32xf32>
    %cst_46 = arith.constant dense<0.000000e+00> : vector<4x32xf32>
    %117 = tpu.matmul %115, %116, %cst_46 {dimension_numbers = #tpu.dot_dimension_numbers<[1], [0], [0], [1], [0, 0, 1, 1], [], []>} : vector<4x16xf32>, vector<16x32xf32>, vector<4x32xf32> -> vector<4x32xf32>
    %118 = arith.addf %114, %117 : vector<4x32xf32>
    %119 = vector.broadcast %99 : vector<1x32xf32> to vector<4x32xf32>
    %120 = arith.addf %118, %119 : vector<4x32xf32>
    %cst_47 = arith.constant 0.000000e+00 : f32
    %121 = vector.broadcast %cst_47 : f32 to vector<4x32xf32>
    %122 = arith.maximumf %120, %121 : vector<4x32xf32>
    %c0_48 = arith.constant 0 : index
    %c0_49 = arith.constant 0 : index
    %c0_50 = arith.constant 0 : index
    %123 = vector.load %arg13[%c0_48, %c0_49, %c0_50] : memref<4x32x32xf32, #tpu.memory_space<vmem>>, vector<4x32x32xf32>
    %124 = vector.extract_strided_slice %122 {offsets = [0, 0], sizes = [1, 32], strides = [1, 1]} : vector<4x32xf32> to vector<1x32xf32>
    %125 = vector.extract_strided_slice %123 {offsets = [0, 0, 0], sizes = [1, 32, 32], strides = [1, 1, 1]} : vector<4x32x32xf32> to vector<1x32x32xf32>
    %126 = vector.shape_cast %125 : vector<1x32x32xf32> to vector<32x32xf32>
    %cst_51 = arith.constant dense<0.000000e+00> : vector<1x32xf32>
    %127 = tpu.matmul %124, %126, %cst_51 {dimension_numbers = #tpu.dot_dimension_numbers<[1], [0], [0], [1], [0, 0, 1, 1], [], []>} : vector<1x32xf32>, vector<32x32xf32>, vector<1x32xf32> -> vector<1x32xf32>
    %128 = vector.extract_strided_slice %122 {offsets = [1, 0], sizes = [1, 32], strides = [1, 1]} : vector<4x32xf32> to vector<1x32xf32>
    %129 = vector.extract_strided_slice %123 {offsets = [1, 0, 0], sizes = [1, 32, 32], strides = [1, 1, 1]} : vector<4x32x32xf32> to vector<1x32x32xf32>
    %130 = vector.shape_cast %129 : vector<1x32x32xf32> to vector<32x32xf32>
    %cst_52 = arith.constant dense<0.000000e+00> : vector<1x32xf32>
    %131 = tpu.matmul %128, %130, %cst_52 {dimension_numbers = #tpu.dot_dimension_numbers<[1], [0], [0], [1], [0, 0, 1, 1], [], []>} : vector<1x32xf32>, vector<32x32xf32>, vector<1x32xf32> -> vector<1x32xf32>
    %132 = arith.addf %127, %131 : vector<1x32xf32>
    %133 = vector.extract_strided_slice %122 {offsets = [2, 0], sizes = [1, 32], strides = [1, 1]} : vector<4x32xf32> to vector<1x32xf32>
    %134 = vector.extract_strided_slice %123 {offsets = [2, 0, 0], sizes = [1, 32, 32], strides = [1, 1, 1]} : vector<4x32x32xf32> to vector<1x32x32xf32>
    %135 = vector.shape_cast %134 : vector<1x32x32xf32> to vector<32x32xf32>
    %cst_53 = arith.constant dense<0.000000e+00> : vector<1x32xf32>
    %136 = tpu.matmul %133, %135, %cst_53 {dimension_numbers = #tpu.dot_dimension_numbers<[1], [0], [0], [1], [0, 0, 1, 1], [], []>} : vector<1x32xf32>, vector<32x32xf32>, vector<1x32xf32> -> vector<1x32xf32>
    %137 = arith.addf %132, %136 : vector<1x32xf32>
    %138 = vector.extract_strided_slice %122 {offsets = [3, 0], sizes = [1, 32], strides = [1, 1]} : vector<4x32xf32> to vector<1x32xf32>
    %139 = vector.extract_strided_slice %123 {offsets = [3, 0, 0], sizes = [1, 32, 32], strides = [1, 1, 1]} : vector<4x32x32xf32> to vector<1x32x32xf32>
    %140 = vector.shape_cast %139 : vector<1x32x32xf32> to vector<32x32xf32>
    %cst_54 = arith.constant dense<0.000000e+00> : vector<1x32xf32>
    %141 = tpu.matmul %138, %140, %cst_54 {dimension_numbers = #tpu.dot_dimension_numbers<[1], [0], [0], [1], [0, 0, 1, 1], [], []>} : vector<1x32xf32>, vector<32x32xf32>, vector<1x32xf32> -> vector<1x32xf32>
    %142 = arith.addf %137, %141 : vector<1x32xf32>
    %c0_55 = arith.constant 0 : index
    %c0_56 = arith.constant 0 : index
    %143 = vector.load %arg14[%c0_55, %c0_56] : memref<1x32xf32, #tpu.memory_space<vmem>>, vector<1x32xf32>
    %144 = arith.addf %142, %143 : vector<1x32xf32>
    %cst_57 = arith.constant 0.000000e+00 : f32
    %145 = vector.broadcast %cst_57 : f32 to vector<1x32xf32>
    %146 = arith.maximumf %144, %145 : vector<1x32xf32>
    %c0_58 = arith.constant 0 : index
    %c0_59 = arith.constant 0 : index
    %147 = vector.load %arg15[%c0_58, %c0_59] : memref<32x3xf32, #tpu.memory_space<vmem>>, vector<32x3xf32>
    %cst_60 = arith.constant dense<0.000000e+00> : vector<1x3xf32>
    %148 = tpu.matmul %146, %147, %cst_60 {dimension_numbers = #tpu.dot_dimension_numbers<[1], [0], [0], [1], [0, 0, 1, 1], [], []>} : vector<1x32xf32>, vector<32x3xf32>, vector<1x3xf32> -> vector<1x3xf32>
    %c0_61 = arith.constant 0 : index
    %c0_62 = arith.constant 0 : index
    %149 = vector.load %arg16[%c0_61, %c0_62] : memref<1x3xf32, #tpu.memory_space<vmem>>, vector<1x3xf32>
    %150 = arith.addf %148, %149 : vector<1x3xf32>
    %c0_63 = arith.constant 0 : index
    %c0_64 = arith.constant 0 : index
    %c0_65 = arith.constant 0 : index
    %151 = vector.load %arg17[%c0_63, %c0_64, %c0_65] : memref<1x1x3xf32, #tpu.memory_space<vmem>>, vector<1x1x3xf32>
    %152 = vector.shape_cast %151 : vector<1x1x3xf32> to vector<1x3xf32>
    %153 = vector.shape_cast %150 : vector<1x3xf32> to vector<1x1x3xf32>
    tpu.vector_store %arg17[%c0_63, %c0_64, %c0_65], %153 {strides = array<i32>} : memref<1x1x3xf32, #tpu.memory_space<vmem>>, vector<1x1x3xf32>,
    return
  }
  func.func @transform_0(%arg0: i32) -> (i32, i32, i32) {
    %c0_i32 = arith.constant 0 : i32
    %c0_i32_0 = arith.constant 0 : i32
    %c0_i32_1 = arith.constant 0 : i32
    return %arg0, %c0_i32, %c0_i32_0 : i32, i32, i32
  }
  func.func @transform_1(%arg0: i32) -> (i32, i32, i32) {
    %c0_i32 = arith.constant 0 : i32
    %c0_i32_0 = arith.constant 0 : i32
    %c0_i32_1 = arith.constant 0 : i32
    return %arg0, %c0_i32, %c0_i32_0 : i32, i32, i32
  }
  func.func @transform_2(%arg0: i32) -> (i32, i32) {
    %c0_i32 = arith.constant 0 : i32
    %c0_i32_0 = arith.constant 0 : i32
    %c0_i32_1 = arith.constant 0 : i32
    return %c0_i32, %c0_i32_0 : i32, i32
  }
  func.func @transform_3(%arg0: i32) -> (i32, i32) {
    %c0_i32 = arith.constant 0 : i32
    %c0_i32_0 = arith.constant 0 : i32
    %c0_i32_1 = arith.constant 0 : i32
    return %c0_i32, %c0_i32_0 : i32, i32
  }
  func.func @transform_4(%arg0: i32) -> (i32, i32) {
    %c0_i32 = arith.constant 0 : i32
    %c0_i32_0 = arith.constant 0 : i32
    %c0_i32_1 = arith.constant 0 : i32
    return %c0_i32, %c0_i32_0 : i32, i32
  }
  func.func @transform_5(%arg0: i32) -> (i32, i32) {
    %c0_i32 = arith.constant 0 : i32
    %c0_i32_0 = arith.constant 0 : i32
    %c0_i32_1 = arith.constant 0 : i32
    return %c0_i32, %c0_i32_0 : i32, i32
  }
  func.func @transform_6(%arg0: i32) -> (i32, i32) {
    %c0_i32 = arith.constant 0 : i32
    %c0_i32_0 = arith.constant 0 : i32
    %c0_i32_1 = arith.constant 0 : i32
    return %c0_i32, %c0_i32_0 : i32, i32
  }
  func.func @transform_7(%arg0: i32) -> (i32, i32) {
    %c0_i32 = arith.constant 0 : i32
    %c0_i32_0 = arith.constant 0 : i32
    %c0_i32_1 = arith.constant 0 : i32
    return %c0_i32, %c0_i32_0 : i32, i32
  }
  func.func @transform_8(%arg0: i32) -> (i32, i32) {
    %c0_i32 = arith.constant 0 : i32
    %c0_i32_0 = arith.constant 0 : i32
    %c0_i32_1 = arith.constant 0 : i32
    return %c0_i32, %c0_i32_0 : i32, i32
  }
  func.func @transform_9(%arg0: i32) -> (i32, i32) {
    %c0_i32 = arith.constant 0 : i32
    %c0_i32_0 = arith.constant 0 : i32
    %c0_i32_1 = arith.constant 0 : i32
    return %c0_i32, %c0_i32_0 : i32, i32
  }
  func.func @transform_10(%arg0: i32) -> (i32, i32) {
    %c0_i32 = arith.constant 0 : i32
    %c0_i32_0 = arith.constant 0 : i32
    %c0_i32_1 = arith.constant 0 : i32
    return %c0_i32, %c0_i32_0 : i32, i32
  }
  func.func @transform_11(%arg0: i32) -> (i32, i32) {
    %c0_i32 = arith.constant 0 : i32
    %c0_i32_0 = arith.constant 0 : i32
    %c0_i32_1 = arith.constant 0 : i32
    return %c0_i32, %c0_i32_0 : i32, i32
  }
  func.func @transform_12(%arg0: i32) -> (i32, i32, i32) {
    %c0_i32 = arith.constant 0 : i32
    %c0_i32_0 = arith.constant 0 : i32
    %c0_i32_1 = arith.constant 0 : i32
    %c0_i32_2 = arith.constant 0 : i32
    return %c0_i32, %c0_i32_0, %c0_i32_1 : i32, i32, i32
  }
  func.func @transform_13(%arg0: i32) -> (i32, i32) {
    %c0_i32 = arith.constant 0 : i32
    %c0_i32_0 = arith.constant 0 : i32
    %c0_i32_1 = arith.constant 0 : i32
    return %c0_i32, %c0_i32_0 : i32, i32
  }
  func.func @transform_14(%arg0: i32) -> (i32, i32) {
    %c0_i32 = arith.constant 0 : i32
    %c0_i32_0 = arith.constant 0 : i32
    %c0_i32_1 = arith.constant 0 : i32
    return %c0_i32, %c0_i32_0 : i32, i32
  }
  func.func @transform_15(%arg0: i32) -> (i32, i32) {
    %c0_i32 = arith.constant 0 : i32
    %c0_i32_0 = arith.constant 0 : i32
    %c0_i32_1 = arith.constant 0 : i32
    return %c0_i32, %c0_i32_0 : i32, i32
  }
  func.func @transform_16(%arg0: i32) -> (i32, i32, i32) {
    %c0_i32 = arith.constant 0 : i32
    %c0_i32_0 = arith.constant 0 : i32
    %c0_i32_1 = arith.constant 0 : i32
    return %arg0, %c0_i32, %c0_i32_0 : i32, i32, i32
  }
}

</mosaic_0001>

<bundles_post_ra>
// kernel: gnns_forward.1
= control target key start
LH: loop header
LB: loop body
LE: loop exit
PB: predicated region body
PF: predicated region fallthrough
CT: control target
= control target key end

     0   :  { %s2392_s0 = inlined_call_operand.vmem [shape: f32[2,20,20], index: 0, kind: input, shape index: {}]   ;;  %s2393_s1 = inlined_call_operand.vmem [shape: f32[2,20,8], index: 1, kind: input, shape index: {}]   ;;  %s2394_s2 = inlined_call_operand.vmem [shape: f32[8,32], index: 2, kind: input, shape index: {}]   ;;  %s2395_s3 = inlined_call_operand.vmem [shape: f32[1,32], index: 3, kind: input, shape index: {}, may-alias: {3,5,11,13}]   ;;  %s2396_s4 = inlined_call_operand.hbm [shape: f32[32,32], index: 4, kind: input, shape index: {}]   ;;  %s2397_s5 = inlined_call_operand.vmem [shape: f32[1,32], index: 5, kind: input, shape index: {}, may-alias: {3,5,11,13}]   ;;  %s2398_s6 = inlined_call_operand.hbm [shape: f32[32,1], index: 6, kind: input, shape index: {}]   ;;  %s2399_s7 = inlined_call_operand.<no memory space> [shape: f32[1,1], index: 7, kind: input, shape index: {}]   ;;  %s2400_s8 = inlined_call_operand.hbm [shape: f32[65,16], index: 8, kind: input, shape index: {}]   ;;  %s2401_s9 = inlined_call_operand.vmem [shape: f32[1,16], index: 9, kind: input, shape index: {}]   ;;  %s2402_s10 = inlined_call_operand.hbm [shape: f32[80,32], index: 10, kind: input, shape index: {}]   ;;  %s2403_s11 = inlined_call_operand.vmem [shape: f32[1,32], index: 11, kind: input, shape index: {}, may-alias: {3,5,11,13}]   ;;  %s2404_s12 = inlined_call_operand.vmem [shape: f32[4,32,32], index: 12, kind: input, shape index: {}]   ;;  %s2405_s13 = inlined_call_operand.vmem [shape: f32[1,32], index: 13, kind: input, shape index: {}, may-alias: {3,5,11,13}]   ;;  %s2406_s14 = inlined_call_operand.hbm [shape: f32[32,3], index: 14, kind: input, shape index: {}]   ;;  %s2407_s15 = inlined_call_operand.vmem [shape: f32[1,3], index: 15, kind: input, shape index: {}]   ;;  %s2408_s16 = inlined_call_operand.hbm [shape: f32[2,1,3], index: 16, kind: output, shape index: {}]  }
   0x1   :  { %2419 = sst [smem:[#allocation24_spill]] %s2392_s0  ;;  %v21_v0 = vstv %s2399_s7 }
   0x2   :  { %2420 = sst [smem:[#allocation25_spill]] %s2398_s6  ;;  %22 = vst [vmem:[#allocation2] sm:$0x1] %v21_v0 }
   0x3   :  { %2421 = sst [smem:[#allocation26_spill]] %s2402_s10 }
   0x4   :  { %2422 = sst [smem:[#allocation27_spill]] %s2407_s15 }
   0x5   :  { %23 = vsyncpa [#allocation4], 0 }
   0x6   :  { %24 = vsyncpa [#allocation7], 0 }
   0x7   :  { %25 = vsyncpa [#allocation10], 0 }
   0x8   :  { %26 = vsyncpa [#allocation5], 0 }
   0x9   :  { %28 = vsyncpa [#allocation5 + $0x1], 0  ;;  %s2059_s23 = smov 0   ;;  %s2061_s24 = smov 0  }
   0xa   :  { %s2063_s25 = smov 0   ;;  %s2065_s26 = smov 0  }
   0xb LB: > { %2423 = sst [smem:[#allocation17_spill]] %s1948_s23  ;;  %s2080_s7 = sadd.s32 4294967295, %s1960_s26   ;;  %s1960_s26 = sphi %s2065_s26, %s2448_s26   ;;  %s1956_s25 = sphi %s2063_s25, %s2450_s25   ;;  %s1952_s24 = sphi %s2061_s24, %s2452_s24   ;;  %s1948_s23 = sphi %s2059_s23, %s2451_s23  }
   0xc   : > { %2424 = sst [smem:[#allocation18_spill]] %s1956_s25  ;;  %s1544_s27 = sadd.s32 4294967294, %s1960_s26  }
   0xd   : > { %2425 = sst [smem:[#allocation19_spill]] %s1960_s26  ;;  %s2084_s28 = sadd.s32 1, %s1960_s26  }
   0xe   : > { %2426 = sst [smem:[#allocation20_spill]] %s2084_s28  ;;  %s387_s29 = sadd.s32 1, %s1956_s25 }
   0xf   : > { %s384_s30 = ssub.s32 %s1960_s26, %s2084_s28  ;;  %p397_p0 = scmp.ne.s32.totalorder %s1956_s25, %s1952_s24 }
  0x10   : > { %p385_p1 = scmp.eq.s32.totalorder %s384_s30, 0  ;;  %p398_p2 = scmp.eq.s32.totalorder %s2080_s7, 1 }
  0x11   : > { %p403_p3 = scmp.ne.s32.totalorder %s1952_s24, %s1948_s23  ;;  %p404_p4 = scmp.eq.s32.totalorder %s1544_s27, 1 }
  0x12   : > { %s2095_s0 = scalar_select %p385_p1, %s1956_s25, %s387_s29  }
  0x13   : > { %p2097_p5 = por %p398_p2, %p397_p0  ;;  %p2101_p6 = por %p404_p4, %p403_p3 }
  0x14   : > { %2427 = sst [smem:[#allocation21_spill]] %s2095_s0  ;;  %p1545_p7 = scmp.ge.s32.totalorder %s1960_s26, 1 }
  0x15   : > { %s2428_s17 = scalar_select %p2097_p5, 1, 0 }
  0x16   : > { %s2430_s18 = scalar_select %p2101_p6, 1, 0 }
  0x17   : > { %2429 = sst [smem:[#allocation22_spill]] %s2428_s17  ;;  %p411_p8 = scmp.lt.s32.totalorder %s1960_s26, 3 }
  0x18   : > { %2431 = sst [smem:[#allocation23_spill]] %s2430_s18  ;;  %p1651_p9 = scmp.eq.s32.totalorder %s2080_s7, 0 }
  0x19   : > { %p2108_p10 = pnand %p1545_p7, %p411_p8  ;;  %s2433_s6 = sld [smem:[#allocation25_spill]] }
  0x1a   : > { %s2434_s10 = sld [smem:[#allocation26_spill]]  ;;  %s1962_s25 = smov [#allocation6]  }
  0x1b   : > { %p1631_p11 = pneg %p2108_p10  ;;  %s447_s28 = sshll.u32 %s1962_s25, 4  ;;  %s448_s28 = int_to_ptr.vmem [resolvable:$true] %s447_s28 }
  0x1c   : > { %s1963_s20 = smov 128   ;;  %s1964_s21 = smov 8  }
  0x1d   : > { %p2122_p12 = pnand %p1651_p9, %p1631_p11  ;;  %s428_s18 = sshll.u32 %s2396_s4, 4  ;;  %s429_s18 = int_to_ptr.hbm [resolvable:$true] %s428_s18 }
  0x1e   : > { %s462_s26 = sshll.u32 %s2400_s8, 4  ;;  %s1966_s17 = smov [#allocation3]   ;;  %s463_s26 = int_to_ptr.hbm [resolvable:$true] %s462_s26 }
  0x1f   : > { %s445_s22 = sshll.u32 %s2433_s6, 4  ;;  %s1965_s6 = smov [#allocation9]   ;;  %s446_s22 = int_to_ptr.hbm [resolvable:$true] %s445_s22 }
  0x20   : > { %s479_s30 = sshll.u32 %s2434_s10, 4  ;;  %s481_s27 = sshll.u32 %s1965_s6, 4  ;;  %s480_s30 = int_to_ptr.hbm [resolvable:$true] %s479_s30  ;;  %s482_s27 = int_to_ptr.vmem [resolvable:$true] %s481_s27 }
  0x21   : > { %1637 = dma.hbm_to_vmem [thread:$0]  (!%p2122_p12), %s446_s22, 512, %s448_s28, [#allocation7], %s1963_s20, %s1963_s20, %s1964_s21  }
  0x22   : > { %1643 = dma.hbm_to_vmem [thread:$0]  (!%p2122_p12), %s480_s30, 1280, %s482_s27, [#allocation10], %s1963_s20, %s1963_s20, %s1964_s21  }
  0x23   : > { %s430_s15 = sshll.u32 %s1966_s17, 4  ;;  %s1967_s6 = smov [#allocation8]   ;;  %s431_s15 = int_to_ptr.vmem [resolvable:$true] %s430_s15 }
  0x24   : > { %1634 = dma.hbm_to_vmem [thread:$0]  (!%p2122_p12), %s429_s18, 512, %s431_s15, [#allocation4], %s1963_s20, %s1963_s20, %s1964_s21  }
  0x25   : > { %s464_s28 = sshll.u32 %s1967_s6, 4  ;;  %s502_s29 = sshll.u32 %s2406_s14, 4  ;;  %s465_s28 = int_to_ptr.vmem [resolvable:$true] %s464_s28  ;;  %s503_s29 = int_to_ptr.hbm [resolvable:$true] %s502_s29 }
  0x26   : > { %1640 = dma.hbm_to_vmem [thread:$0]  (!%p2122_p12), %s463_s26, 1152, %s465_s28, [#allocation7], %s1963_s20, %s1963_s20, %s1964_s21  }
  0x27   : > { %s1968_s30 = smov [#allocation11]   ;;  %539 = sbr.rel (%p2108_p10) target bundleno = 1658 (0x67a), region = 84 }
  0x28   : > { %s504_s23 = sshll.u32 %s1968_s30, 4  ;;  %s505_s23 = int_to_ptr.vmem [resolvable:$true] %s504_s23 }
  0x29   : > { %1646 = dma.hbm_to_vmem [thread:$0]  (!%p2122_p12), %s503_s29, 512, %s505_s23, [#allocation10], %s1963_s20, %s1963_s20, %s1964_s21  }
  0x2c   : > { %1931 = dma.done.wait (%p1651_p9), [#allocation4], 512  }
  0x2d   : > { %1933 = vsyncadd (%p1651_p9), [#allocation4], 4294966784 }
  0x2e   : > { %1935 = dma.done.wait (%p1651_p9), [#allocation7], 1664  }
  0x2f   : > { %1937 = vsyncadd (%p1651_p9), [#allocation7], 4294965632 }
  0x30   : > { %1939 = dma.done.wait (%p1651_p9), [#allocation10], 1792  }
  0x31   : > { %1941 = vsyncadd (%p1651_p9), [#allocation10], 4294965504  ;;  %p614_p13 = scmp.lt.s32.totalorder %s2080_s7, 1  ;;  %v627_v1 = vlaneseq  ;;  %vm714_vm1 = vcmask 64512   ;;  %s2436_s21 = sld [smem:[#allocation24_spill]]  ;;  %v1969_v6 = vmov 0.0  }
  0x32   : > { %v712_v8 = vld [vmem:[%s2394_s2] sm:$0xff]  ;;  %vm2418_vm4 = vcmask 158720   ;;  %vm645_vm5 = vcmask 162816   ;;  %vm762_vm8 = vcmask 1043456   ;;  %s612_s0 = sand.u32 1, %s1952_s24   ;;  %s1423_s19 = scalar_lea.hbm %s2408_s16, %s2080_s7 }
  0x33   : > { %s615_s15 = scalar_select %p614_p13, %s2080_s7, 1  ;;  %v2161_v2 = vshrl.u32 %v627_v1, 7  ;;  %v2163_v3 = vand.u32 127, %v627_v1  ;;  %739 = vmatpush.msra.mxu0 %v712_v8 }
  0x34   : > { %s613_s6 = scalar_lea.vmem [#allocation12], %s612_s0  ;;  %s1427_s22 = sshll.u32 %s1423_s19, 4  ;;  %s1428_s22 = int_to_ptr.hbm [resolvable:$true] %s1427_s22 }
  0x35   : > { %s1608_s26 = smul.u32 24, %s615_s15  ;;  %v2166_v4 = vadd.s32 16, %v2161_v2  ;;  %vm633_vm0 = vcmp.eq.s32.totalorder %v2161_v2, %v2163_v3  ;;  %v2171_v5 = vadd.s32 8, %v2161_v2  ;;  %s1425_s28 = sshll.u32 %s613_s6, 4  ;;  %s1426_s28 = int_to_ptr.vmem [resolvable:$true] %s1425_s28 }
  0x36   : > { %v2182_v7 = vsel %vm633_vm0, 1.0, %v1969_v6  ;;  %vm2417_vm0 = vcmask 261120   ;;  %s1415_s10 = scalar_lea.sflag [#allocation5], %s612_s0  ;;  %s1900_s29 = sshra.s32 %s1428_s22, 4  ;;  %s1901_s29 = int_to_ptr.hbm [resolvable:$true] %s1900_s29 }
  0x37   : > { %s623_s18 = scalar_lea.vmem %s2393_s1, %s1608_s26  ;;  %s618_s27 = scalar_lea.vmem %s2436_s21, %s1608_s26  ;;  %vm635_vm2 = vcmp.eq.s32.totalorder %v2166_v4, %v2163_v3  ;;  %vm634_vm3 = vcmp.eq.s32.totalorder %v2171_v5, %v2163_v3 }
  0x38   : > { %v709_v9 = vld [vmem:[%s623_s18] sm:$0xff]  ;;  %v626_v10 = vld [vmem:[%s618_s27 + $0x10] sm:$0xf]  ;;  %v2190_v11 = vsel %vm635_vm2, 1.0, %v1969_v6  ;;  %v2200_v15 = vsel %vm634_vm3, 1.0, %v1969_v6  ;;  %v625_v17 = vld [vmem:[%s618_s27 + $0x8] sm:$0xff]  ;;  %vm982_vm2 = vcmp.lt.s32.totalorder %v2171_v5, %v2163_v3  ;;  %vm983_vm3 = vcmp.lt.s32.totalorder %v2166_v4, %v2163_v3  ;;  %p1907_p3 = scmp.lt.s32.totalorder %s1901_s29, %s2408_s16 }
  0x39   : > { %v2193_v12 = vadd.f32 %v2190_v11, %v626_v10  ;;  %v624_v13 = vld [vmem:[%s618_s27] sm:$0xff]  ;;  %1563 = vmatmul.msk.f32.vlgmr.msra.gmra.mxu0 %vm714_vm1, %v709_v9  ;;  %v2207_v19 = vadd.f32 %v2200_v15, %v625_v17  ;;  %v710_v20 = vld [vmem:[%s623_s18 + $0x8] sm:$0xff]  ;;  %v711_v22 = vld [vmem:[%s623_s18 + $0x10] sm:$0xf]  ;;  %s2443_s27 = sld [smem:[#allocation27_spill]]  ;;  %s1902_s30 = scalar_lea.hbm %s1901_s29, 1 }
  0x3a   : > { %v2197_v14 = vadd.f32 %v2182_v7, %v624_v13  ;;  %p1903_p0 = scmp.ne.s32.totalorder %s1901_s29, %s1902_s30  ;;  %s1906_s15 = scalar_lea.hbm %s2408_s16, 2 }
  0x3b   : > { %v653_v16 = vsel %vm2418_vm4, %v2193_v12, 0.0  ;;  %v649_v21 = vsel %vm645_vm5, %v2207_v19, 0.0  ;;  %p1908_p4 = scmp.lt.s32.totalorder %s1906_s15, %s1902_s30 }
  0x3c   : > { %654 = vadd.xlane.f32.xlu1 %v653_v16  ;;  %v646_v18 = vsel %vm645_vm5, %v2197_v14, 0.0  ;;  %p1904_p1 = pnand %p1903_p0, %p2097_p5 }
  0x3d   : > { %647 = vadd.xlane.f32.xlu0 %v646_v18  ;;  %p1909_p7 = por %p1908_p4, %p1907_p3 }
  0x3e   : > { %p1905_p2 = pneg %p1904_p1 }
  0x40   : > { %p1910_p8 = pnand %p1909_p7, %p1905_p2 }
  0x41   : > { %1564 = vmatmul.msk.f32.gmra.mxu0 %vm714_vm1, %v710_v20  ;;  %v797_v20 = vld [vmem:[#allocation3 + $0x10] sm:$0xff] }
  0x45   : > { %650 = vadd.xlane.f32.xlu0 %v649_v21  ;;  %v796_v21 = vld [vmem:[#allocation3 + $0x8] sm:$0xff] }
  0x49   : > { %1565 = vmatmul.msk.f32.gmra.mxu0 %vm714_vm1, %v711_v22  ;;  %v795_v22 = vld [vmem:[#allocation3] sm:$0xff]  ;;  %vm981_vm1 = vcmp.lt.s32.totalorder %v2161_v2, %v2163_v3 }
  0xaf   : > { %v655_v23 = vpop.xlane.xlu1 %654 }
  0xb0   : > { %v658_v24 = vmax.f32 %v655_v23, 1e-12  ;;  %v648_v25 = vpop.xlane.xlu0 %647  ;;  %v1014_v23 = vld [vmem:[#allocation8 + $0x10] sm:$0xff] }
  0xb1   : > { %v656_v26 = vmax.f32 %v648_v25, 1e-12  ;;  %v1012_v25 = vld [vmem:[#allocation8] sm:$0xff] }
  0xb2   : > { %1712 = vrsqrt.f32 %v658_v24  ;;  %vm685_vm7 = vweird.f32 %v658_v24 }
  0xb3   : > { %1714 = vrsqrt.f32 %v656_v26  ;;  %vm665_vm10 = vweird.f32 %v656_v26 }
  0xb6   : > { %v741_v27 = vpop.f32.mrf.mxu0 }
  0xb8   : > { %v1713_v28 = vpop.eup %1712  ;;  %v651_v29 = vpop.xlane.xlu0 %650 }
  0xb9   : > { %v1715_v30 = vpop.eup %1714  ;;  %v680_v31 = vmul.f32 %v1713_v28, %v658_v24  ;;  %v657_v32 = vmax.f32 %v651_v29, 1e-12  ;;  %vm686_vm9 = vweird.f32 %v1713_v28  ;;  %v1013_v24 = vld [vmem:[#allocation8 + $0x8] sm:$0xff] }
  0xba   : > { %v660_v33 = vmul.f32 %v1715_v30, %v656_v26  ;;  %vm666_vm6 = vweird.f32 %v1715_v30  ;;  %vm687_vm13 = vmor %vm685_vm7, %vm686_vm9 }
  0xbb   : > { %v681_v34 = vmul.f32 %v1713_v28, %v680_v31  ;;  %1716 = vrsqrt.f32 %v657_v32  ;;  %vm667_vm11 = vmor %vm665_vm10, %vm666_vm6  ;;  %vm675_vm14 = vweird.f32 %v657_v32 }
  0xbc   : > { %v661_v35 = vmul.f32 %v1715_v30, %v660_v33 }
  0xbd   : > { %v682_v36 = vmul.f32 0.5, %v681_v34 }
  0xbe   : > { %v662_v37 = vmul.f32 0.5, %v661_v35  ;;  %v744_v38 = vpop.f32.mrf.mxu0 }
  0xbf   : > { %v683_v41 = vsub.f32 1.5, %v682_v36 }
  0xc0   : > { %v663_v39 = vsub.f32 1.5, %v662_v37 }
  0xc1   : > { %v1717_v40 = vpop.eup %1716  ;;  %v684_v45 = vmul.f32 %v1713_v28, %v683_v41  ;;  %v1018_v41 = vld [vmem:[#allocation8 + $0x30] sm:$0xff] }
  0xc2   : > { %v670_v42 = vmul.f32 %v1717_v40, %v657_v32  ;;  %v664_v43 = vmul.f32 %v1715_v30, %v663_v39  ;;  %vm676_vm12 = vweird.f32 %v1717_v40  ;;  %v1019_v39 = vld [vmem:[#allocation8 + $0x38] sm:$0xff] }
  0xc3   : > { %v688_v50 = vsel %vm687_vm13, %v1713_v28, %v684_v45  ;;  %vm677_vm15 = vmor %vm675_vm14, %vm676_vm12  ;;  %v1016_v45 = vld [vmem:[#allocation8 + $0x20] sm:$0xff] }
  0xc4   : > { %v671_v44 = vmul.f32 %v1717_v40, %v670_v42  ;;  %v668_v49 = vsel %vm667_vm11, %v1715_v30, %v664_v43  ;;  %v691_v54 = vmul.f32 %v2190_v11, %v688_v50  ;;  %v705_v17 = vmul.f32 %v688_v50, %v2193_v12  ;;  %v1706_v12 = vld [vmem:[%s2395_s3] ss:$0 sm:$0xff]  ;;  %v872_v42 = vld [vmem:[#allocation6 + $0x8] sm:$0xff] }
  0xc5   : > { %v689_v52 = vmul.f32 %v2182_v7, %v668_v49  ;;  %v703_v9 = vmul.f32 %v668_v49, %v2197_v14  ;;  %v798_v14 = vld [vmem:[#allocation3 + $0x18] sm:$0xff]  ;;  %v1017_v43 = vld [vmem:[#allocation8 + $0x28] sm:$0xff] }
  0xc6   : > { %v672_v46 = vmul.f32 0.5, %v671_v44  ;;  %v747_v47 = vpop.f32.mrf.mxu0  ;;  %v695_v59 = vsel %vm2418_vm4, %v691_v54, 0.0  ;;  %822 = vmatpush.msra.mxu2 %v798_v14  ;;  %v871_v44 = vld [vmem:[#allocation6] sm:$0xff] }
  0xc7   : > { %1566 = vmatpush.msk.msra.mxu1 %vm762_vm8, %v747_v47  ;;  %v692_v57 = vsel %vm645_vm5, %v689_v52, 0.0 }
  0xc8   : > { %v673_v48 = vsub.f32 1.5, %v672_v46  ;;  %823 = vmatpush.msra.mxu2 %v797_v20  ;;  %v1707_v46 = vld [vmem:[%s2397_s5] ss:$0 sm:$0xff] }
  0xc9   : > { %780 = vmatpush.msra.mxu1 %v744_v38  ;;  %v874_v38 = vld [vmem:[#allocation6 + $0x18] sm:$0xff] }
  0xca   : > { %v674_v51 = vmul.f32 %v1717_v40, %v673_v48  ;;  %824 = vmatpush.msra.mxu2 %v796_v21  ;;  %897 = vmatpush.msrb.mxu0 %v874_v38  ;;  %v1709_v21 = vld [vmem:[#allocation8 + $0x40] ss:$0 sm:$0xff] }
  0xcb   : > { %781 = vmatpush.msra.mxu1 %v741_v27 }
  0xcc   : > { %v678_v53 = vsel %vm677_vm15, %v1717_v40, %v674_v51  ;;  %825 = vmatpush.msra.mxu2 %v795_v22  ;;  %v873_v40 = vld [vmem:[#allocation6 + $0x10] sm:$0xff] }
  0xcd   : > { %v690_v55 = vmul.f32 %v2200_v15, %v678_v53  ;;  %v704_v13 = vmul.f32 %v678_v53, %v2207_v19  ;;  %v1015_v19 = vld [vmem:[#allocation8 + $0x18] sm:$0xff]  ;;  %898 = vmatpush.msrb.mxu0 %v873_v40 }
  0xce   : > { %1059 = vmatpush.msrb.mxu2 %v1015_v19 }
  0xcf   : > { %v693_v56 = vsel %vm645_vm5, %v690_v55, 0.0  ;;  %899 = vmatpush.msrb.mxu0 %v872_v42 }
  0xd0   : > { %v694_v58 = vadd.f32 %v693_v56, %v692_v57  ;;  %1060 = vmatpush.msrb.mxu2 %v1014_v23 }
  0xd1   : > { %900 = vmatpush.msrb.mxu0 %v871_v44 }
  0xd2   : > { %v696_v60 = vadd.f32 %v695_v59, %v694_v58  ;;  %1061 = vmatpush.msrb.mxu2 %v1013_v24  ;;  %v1970_v59 = vmov 0  }
  0xd3   : > { %1703 = vset.pattern.permute.xlu1 %v1970_v59  ;;  %1704 = vset.pattern.permute.xlu2 %v1970_v59 }
  0xd4   : > { %v697_v61 = vrot.slane %v696_v60, 4  ;;  %1062 = vmatpush.msrb.mxu2 %v1012_v25  ;;  %1705 = vset.pattern.permute.xlu0 %v1970_v59 }
  0xd6   : > { %v698_v62 = vadd.f32 %v697_v61, %v696_v60  ;;  %v1708_v60 = vld [vmem:[#allocation2] ss:$0 sm:$0xff] }
  0xd8   : > { %v699_v63 = vrot.slane %v698_v62, 2 }
  0xda   : > { %v700_v0 = vadd.f32 %v699_v63, %v698_v62 }
  0xdc   : > { %v701_v1 = vrot.slane %v700_v0, 1 }
  0xde   : > { %v702_v8 = vadd.f32 %v701_v1, %v700_v0 }
  0xe0   : > { %v2221_v10 = vmul.f32 %v703_v9, %v702_v8  ;;  %v2226_v16 = vmul.f32 %v704_v13, %v702_v8  ;;  %v2231_v18 = vmul.f32 %v705_v17, %v702_v8 }
  0xe2   : > { %1567 = vmatmul.msk.f32.vlgmr.msra.gmra.mxu1 %vm645_vm5, %v2221_v10 }
  0xea   : > { %1568 = vmatmul.msk.f32.gmra.mxu1 %vm645_vm5, %v2226_v16 }
  0xf2   : > { %1569 = vmatmul.msk.f32.gmra.mxu1 %vm645_vm5, %v2231_v18 }
 0x15f   : > { %v783_v26 = vpop.f32.mrf.mxu1 }
 0x160   : > { %v784_v27 = vadd.f32 %v1706_v12, %v783_v26 }
 0x162   : > { %1718 = vtanh.f32 %v784_v27 }
 0x167   : > { %v786_v28 = vpop.f32.mrf.mxu1 }
 0x168   : > { %v1719_v29 = vpop.eup %1718  ;;  %v787_v30 = vadd.f32 %v1706_v12, %v786_v28 }
 0x169   : > { %1570 = vmatmul.msk.f32.vlgmr.msra.gmra.mxu2 %vm2417_vm0, %v1719_v29 }
 0x16a   : > { %1720 = vtanh.f32 %v787_v30 }
 0x16f   : > { %v789_v31 = vpop.f32.mrf.mxu1 }
 0x170   : > { %v1721_v32 = vpop.eup %1720  ;;  %v790_v33 = vadd.f32 %v1706_v12, %v789_v31 }
 0x171   : > { %1571 = vmatmul.msk.f32.gmra.mxu2 %vm2417_vm0, %v1721_v32 }
 0x172   : > { %1722 = vtanh.f32 %v790_v33 }
 0x178   : > { %v1723_v34 = vpop.eup %1722 }
 0x179   : > { %1572 = vmatmul.msk.f32.gmra.mxu2 %vm2417_vm0, %v1723_v34 }
 0x181   : > { %1589 = vmatmul.msk.f32.vlgmr.msrb.gmra.mxu2 %vm2417_vm0, %v1719_v29 }
 0x189   : > { %1590 = vmatmul.msk.f32.gmra.mxu2 %vm2417_vm0, %v1721_v32 }
 0x191   : > { %1591 = vmatmul.msk.f32.gmra.mxu2 %vm2417_vm0, %v1723_v34 }
 0x1ec   : > { %v827_v35 = vpop.f32.mrf.mxu2 }
 0x1f4   : > { %v830_v36 = vpop.f32.mrf.mxu2 }
 0x1fc   : > { %v833_v37 = vpop.f32.mrf.mxu2 }
 0x1fd   : > { %1573 = vmatpush.msk.msra.mxu3 %vm762_vm8, %v833_v37 }
 0x1ff   : > { %856 = vmatpush.msra.mxu3 %v830_v36 }
 0x201   : > { %857 = vmatpush.msra.mxu3 %v827_v35 }
 0x202   : > { %1574 = vmatmul.msk.f32.vlgmr.msra.gmra.mxu3 %vm645_vm5, %v2221_v10 }
 0x203   : > { %1033 = vmatpush.msrb.mxu3 %v1019_v39 }
 0x204   : > { %v1064_v17 = vpop.f32.mrf.mxu2 }
 0x205   : > { %1034 = vmatpush.msrb.mxu3 %v1018_v41 }
 0x207   : > { %1035 = vmatpush.msrb.mxu3 %v1017_v43 }
 0x209   : > { %1036 = vmatpush.msrb.mxu3 %v1016_v45 }
 0x20a   : > { %1575 = vmatmul.msk.f32.gmra.mxu3 %vm645_vm5, %v2226_v16 }
 0x20c   : > { %v1067_v14 = vpop.f32.mrf.mxu2 }
 0x212   : > { %1576 = vmatmul.msk.f32.gmra.mxu3 %vm645_vm5, %v2231_v18 }
 0x214   : > { %v1070_v19 = vpop.f32.mrf.mxu2 }
 0x285   : > { %v859_v47 = vpop.f32.mrf.mxu3 }
 0x286   : > { %v860_v48 = vadd.f32 %v1707_v46, %v859_v47 }
 0x288   : > { %1724 = vtanh.f32 %v860_v48 }
 0x28d   : > { %v862_v49 = vpop.f32.mrf.mxu3 }
 0x28e   : > { %v1725_v50 = vpop.eup %1724  ;;  %v863_v51 = vadd.f32 %v1707_v46, %v862_v49 }
 0x28f   : > { %1577 = vmatmul.msk.f32.vlgmr.msrb.gmra.mxu0 %vm2417_vm0, %v1725_v50  ;;  %1586 = vmatmul.msk.f32.vlgmr.msrb.gmra.mxu3 %vm2417_vm0, %v1725_v50 }
 0x290   : > { %1726 = vtanh.f32 %v863_v51 }
 0x295   : > { %v865_v52 = vpop.f32.mrf.mxu3 }
 0x296   : > { %v1727_v53 = vpop.eup %1726  ;;  %v866_v54 = vadd.f32 %v1707_v46, %v865_v52  ;;  %v1004_v52 = vmul.u32 2, %v2161_v2  ;;  %v1143_v2 = vld [vmem:[#allocation9 + $0x38] sm:$0xff] }
 0x297   : > { %1578 = vmatmul.msk.f32.gmra.mxu0 %vm2417_vm0, %v1727_v53  ;;  %1587 = vmatmul.msk.f32.gmra.mxu3 %vm2417_vm0, %v1727_v53 }
 0x298   : > { %1728 = vtanh.f32 %v866_v54 }
 0x29e   : > { %v1729_v55 = vpop.eup %1728 }
 0x29f   : > { %1579 = vmatmul.msk.f32.gmra.mxu0 %vm2417_vm0, %v1729_v55  ;;  %1588 = vmatmul.msk.f32.gmra.mxu3 %vm2417_vm0, %v1729_v55  ;;  %v1008_v55 = vadd.s32 1, %v1004_v52 }
 0x30c   : > { %v902_v56 = vpop.f32.mrf.mxu0 }
 0x314   : > { %v905_v57 = vpop.f32.mrf.mxu0 }
 0x31c   : > { %v908_v58 = vpop.f32.mrf.mxu0 }
 0x31d   : > { %1580 = vmatpush.msk.msrb.mxu1 %vm762_vm8, %v908_v58 }
 0x31f   : > { %931 = vmatpush.msrb.mxu1 %v905_v57 }
 0x321   : > { %932 = vmatpush.msrb.mxu1 %v902_v56 }
 0x322   : > { %1581 = vmatmul.msk.f32.vlgmr.msrb.gmra.mxu1 %vm645_vm5, %v2221_v10 }
 0x32a   : > { %1582 = vmatmul.msk.f32.gmra.mxu1 %vm645_vm5, %v2226_v16  ;;  %v1038_v16 = vpop.f32.mrf.mxu3 }
 0x32b   : > { %v1065_v31 = vadd.f32 %v1064_v17, %v1038_v16 }
 0x332   : > { %1583 = vmatmul.msk.f32.gmra.mxu1 %vm645_vm5, %v2231_v18  ;;  %v1041_v18 = vpop.f32.mrf.mxu3 }
 0x333   : > { %v1068_v26 = vadd.f32 %v1067_v14, %v1041_v18 }
 0x33a   : > { %v1044_v22 = vpop.f32.mrf.mxu3 }
 0x33b   : > { %v1071_v24 = vadd.f32 %v1070_v19, %v1044_v22 }
 0x39f   : > { %v934_v61 = vpop.f32.mrf.mxu1 }
 0x3a0   : > { %v935_v62 = vadd.f32 %v1708_v60, %v934_v61  ;;  %v1136_v61 = vld [vmem:[#allocation9] sm:$0xff] }
 0x3a2   : > { %1730 = vtanh.f32 %v935_v62  ;;  %v1141_v62 = vld [vmem:[#allocation9 + $0x28] sm:$0xff] }
 0x3a7   : > { %v937_v63 = vpop.f32.mrf.mxu1 }
 0x3a8   : > { %v1731_v0 = vpop.eup %1730  ;;  %v938_v1 = vadd.f32 %v1708_v60, %v937_v63  ;;  %v1138_v63 = vld [vmem:[#allocation9 + $0x10] sm:$0xff] }
 0x3a9   : > { %948 = vperm.xlu1 %1703, %v1731_v0   ;;  %v1140_v0 = vld [vmem:[#allocation9 + $0x20] sm:$0xff] }
 0x3aa   : > { %1732 = vtanh.f32 %v938_v1  ;;  %v1142_v1 = vld [vmem:[#allocation9 + $0x30] sm:$0xff] }
 0x3af   : > { %v940_v8 = vpop.f32.mrf.mxu1 }
 0x3b0   : > { %v1733_v9 = vpop.eup %1732  ;;  %v941_v10 = vadd.f32 %v1708_v60, %v940_v8  ;;  %v1139_v60 = vld [vmem:[#allocation9 + $0x18] sm:$0xff]  ;;  %v1144_v8 = vld [vmem:[#allocation9 + $0x40] sm:$0xff] }
 0x3b1   : > { %953 = vperm.xlu2 %1704, %v1733_v9   ;;  %1166 = vmatpush.msra.mxu3 %v1139_v60  ;;  %v1710_v9 = vld [vmem:[%s2401_s9] ss:$0 sm:$0xff] }
 0x3b2   : > { %1734 = vtanh.f32 %v941_v10 }
 0x3b3   : > { %1167 = vmatpush.msra.mxu3 %v1138_v63 }
 0x3b8   : > { %v1735_v13 = vpop.eup %1734 }
 0x3b9   : > { %958 = vperm.xlu2 %1704, %v1735_v13  }
 0x40b   : > { %v954_v20 = vpop.permute.xlu2 %953 }
 0x40c   : > { %v1075_v12 = vmul.f32 %v1709_v21, %v954_v20  ;;  %v962_v29 = vmul.f32 %v2200_v15, %v954_v20 }
 0x40e   : > { %v1078_v28 = vadd.f32 %v1075_v12, %v1068_v26  ;;  %v965_v35 = vsel %vm645_vm5, %v962_v29, 0.0  ;;  %v1278_v12 = vld [vmem:[%s2404_s12 + $0x38] sm:$0xff]  ;;  %v1272_v29 = vld [vmem:[%s2404_s12 + $0x8] sm:$0xff] }
 0x40f   : > { %v1282_v26 = vld [vmem:[%s2404_s12 + $0x58] sm:$0xff] }
 0x413   : > { %v959_v23 = vpop.permute.xlu2 %958 }
 0x414   : > { %v1076_v25 = vmul.f32 %v1709_v21, %v959_v23  ;;  %v963_v32 = vmul.f32 %v2190_v11, %v959_v23 }
 0x416   : > { %v1079_v27 = vadd.f32 %v1076_v25, %v1071_v24  ;;  %v967_v39 = vsel %vm2418_vm4, %v963_v32, 0.0  ;;  %v1274_v24 = vld [vmem:[%s2404_s12 + $0x18] sm:$0xff]  ;;  %v1273_v25 = vld [vmem:[%s2404_s12 + $0x10] sm:$0xff]  ;;  %v1276_v32 = vld [vmem:[%s2404_s12 + $0x28] sm:$0xff] }
 0x418   : > { %1592 = vmatpush.msk.msra.mxu0 %vm762_vm8, %v1079_v27  ;;  %1594 = vmatpush.msk.msra.mxu1 %vm762_vm8, %v1079_v27  ;;  %v1286_v27 = vld [vmem:[%s2404_s12 + $0x78] sm:$0xff] }
 0x41a   : > { %1104 = vmatpush.msra.mxu0 %v1078_v28  ;;  %1128 = vmatpush.msra.mxu1 %v1078_v28  ;;  %v1277_v28 = vld [vmem:[%s2404_s12 + $0x30] sm:$0xff] }
 0x41b   : > { %v949_v30 = vpop.permute.xlu1 %948 }
 0x41c   : > { %v961_v33 = vmul.f32 %v2182_v7, %v949_v30  ;;  %v1074_v34 = vmul.f32 %v1709_v21, %v949_v30 }
 0x41e   : > { %v964_v36 = vsel %vm645_vm5, %v961_v33, 0.0  ;;  %v1077_v37 = vadd.f32 %v1074_v34, %v1065_v31  ;;  %v1285_v31 = vld [vmem:[%s2404_s12 + $0x70] sm:$0xff]  ;;  %v1271_v33 = vld [vmem:[%s2404_s12] sm:$0xff]  ;;  %v1280_v34 = vld [vmem:[%s2404_s12 + $0x48] sm:$0xff] }
 0x41f   : > { %v966_v38 = vadd.f32 %v965_v35, %v964_v36  ;;  %v1284_v35 = vld [vmem:[%s2404_s12 + $0x68] sm:$0xff]  ;;  %v1275_v36 = vld [vmem:[%s2404_s12 + $0x20] sm:$0xff] }
 0x420   : > { %1105 = vmatpush.msra.mxu0 %v1077_v37  ;;  %1129 = vmatpush.msra.mxu1 %v1077_v37  ;;  %v1279_v37 = vld [vmem:[%s2404_s12 + $0x40] sm:$0xff] }
 0x421   : > { %v968_v15 = vadd.f32 %v967_v39, %v966_v38  ;;  %v1283_v38 = vld [vmem:[%s2404_s12 + $0x60] sm:$0xff] }
 0x422   : > { %1211 = vmatpush.msrb.mxu0 %v1141_v62  ;;  %1235 = vmatpush.msrb.mxu1 %v1143_v2  ;;  %v1388_v62 = vld [vmem:[%s2443_s27] sm:$0x1] }
 0x423   : > { %v969_v40 = vrot.slane %v968_v15, 4 }
 0x424   : > { %1212 = vmatpush.msrb.mxu0 %v1140_v0  ;;  %1236 = vmatpush.msrb.mxu1 %v1142_v1 }
 0x425   : > { %v970_v41 = vadd.f32 %v969_v40, %v968_v15 }
 0x427   : > { %v971_v42 = vrot.slane %v970_v41, 2 }
 0x429   : > { %v972_v43 = vadd.f32 %v971_v42, %v970_v41 }
 0x42b   : > { %v973_v44 = vrot.slane %v972_v43, 1 }
 0x42d   : > { %v974_v7 = vadd.f32 %v973_v44, %v972_v43 }
 0x42f   : > { %vm978_vm6 = vcmp.eq.f32.partialorder %v949_v30, %v974_v7  ;;  %vm975_vm7 = vcmp.gt.f32.partialorder %v949_v30, %v974_v7  ;;  %vm979_vm8 = vcmp.eq.f32.partialorder %v954_v20, %v974_v7  ;;  %vm980_vm9 = vcmp.eq.f32.partialorder %v959_v23, %v974_v7  ;;  %v1281_v30 = vld [vmem:[%s2404_s12 + $0x50] sm:$0xff] }
 0x430   : > { %vm984_vm10 = vmand %vm978_vm6, %vm981_vm1  ;;  %vm976_vm11 = vcmp.gt.f32.partialorder %v954_v20, %v974_v7  ;;  %vm977_vm13 = vcmp.gt.f32.partialorder %v959_v23, %v974_v7  ;;  %vm2437_vm1 = vcmask 158720   ;;  %v1711_v7 = vld [vmem:[%s2403_s11] ss:$0 sm:$0xff] }
 0x431   : > { %vm985_vm12 = vmand %vm979_vm8, %vm982_vm2 }
 0x432   : > { %vm986_vm14 = vmand %vm980_vm9, %vm983_vm3  ;;  %vm1412_vm9 = vcmask 16384  }
 0x433   : > { %vm987_vm15 = vmor %vm975_vm7, %vm984_vm10 }
 0x434   : > { %vm988_vm0 = vmor %vm976_vm11, %vm985_vm12  ;;  %v990_v11 = vsel %vm987_vm15, 1, %v1970_v59 }
 0x435   : > { %vm989_vm4 = vmor %vm977_vm13, %vm986_vm14  ;;  %v991_v45 = vsel %vm988_vm0, 1, %v1970_v59  ;;  %v993_v5 = vsel %vm645_vm5, %v990_v11, 0 }
 0x436   : > { %v992_v3 = vsel %vm989_vm4, 1, %v1970_v59  ;;  %v994_v4 = vsel %vm645_vm5, %v991_v45, 0  ;;  %v1137_v59 = vld [vmem:[#allocation9 + $0x8] sm:$0xff]  ;;  %vm1149_vm4 = vcmask 130048  }
 0x437   : > { %v996_v46 = vadd.s32 %v994_v4, %v993_v5  ;;  %v995_v47 = vsel %vm2437_vm1, %v992_v3, 0  ;;  %1188 = vmatpush.msra.mxu2 %v1137_v59 }
 0x439   : > { %v997_v48 = vadd.s32 %v996_v46, %v995_v47  ;;  %1189 = vmatpush.msra.mxu2 %v1136_v61 }
 0x43b   : > { %v998_v49 = vrot.slane %v997_v48, 4  ;;  %1303 = vmatpush.msrb.mxu2 %v1278_v12 }
 0x43d   : > { %v999_v50 = vadd.s32 %v998_v49, %v997_v48  ;;  %1304 = vmatpush.msrb.mxu2 %v1277_v28  ;;  %v1387_v48 = vld [vmem:[#allocation11 + $0x18] sm:$0xff]  ;;  %v1386_v49 = vld [vmem:[#allocation11 + $0x10] sm:$0xff] }
 0x43f   : > { %v1000_v51 = vrot.slane %v999_v50, 2  ;;  %1305 = vmatpush.msrb.mxu2 %v1276_v32 }
 0x441   : > { %v1001_v53 = vadd.s32 %v1000_v51, %v999_v50  ;;  %1306 = vmatpush.msrb.mxu2 %v1275_v36  ;;  %v1385_v50 = vld [vmem:[#allocation11 + $0x8] sm:$0xff]  ;;  %v1384_v51 = vld [vmem:[#allocation11] sm:$0xff] }
 0x443   : > { %v1002_v54 = vrot.slane %v1001_v53, 1 }
 0x445   : > { %v1003_v56 = vadd.s32 %v1002_v54, %v1001_v53 }
 0x447   : > { %vm1005_vm0 = vcmp.eq.s32.totalorder %v1003_v56, %v1004_v52  ;;  %vm1009_vm2 = vcmp.eq.s32.totalorder %v1003_v56, %v1008_v55 }
 0x448   : > { %v1584_v57 = vsel %vm1005_vm0, 1.0, %v1969_v6  ;;  %v1585_v58 = vsel %vm1009_vm2, 1.0, %v1969_v6  ;;  %v1145_v6 = vld [vmem:[#allocation9 + $0x48] sm:$0xff] }
 0x449   : > { %1593 = vmatmul.msk.f32.vlgmr.msra.gmra.mxu0 %vm645_vm5, %v1584_v57  ;;  %1595 = vmatmul.msk.f32.vlgmr.msra.gmra.mxu1 %vm645_vm5, %v1585_v58  ;;  %vm2438_vm5 = vcmask 261120   ;;  %v1381_v58 = vld [vmem:[%s2405_s13] sm:$0x1] }
 0x44a   : > { %1259 = vmatpush.msrb.mxu3 %v1145_v6  ;;  %1325 = vmatpush.msra.mxu0 %v1274_v24  ;;  %vm2439_vm3 = vmmov %vm2438_vm5 }
 0x44b   : > { %1348 = vmatpush.msra.mxu1 %v1282_v26  ;;  %vm2440_vm6 = vmmov %vm2439_vm3 }
 0x44c   : > { %1260 = vmatpush.msrb.mxu3 %v1144_v8  ;;  %1326 = vmatpush.msra.mxu0 %v1273_v25  ;;  %vm2441_vm7 = vmmov %vm2439_vm3 }
 0x44d   : > { %1349 = vmatpush.msra.mxu1 %v1281_v30  ;;  %vm2442_vm8 = vmmov %vm2439_vm3 }
 0x44e   : > { %1327 = vmatpush.msra.mxu0 %v1272_v29 }
 0x44f   : > { %1350 = vmatpush.msra.mxu1 %v1280_v34 }
 0x450   : > { %1328 = vmatpush.msra.mxu0 %v1271_v33 }
 0x451   : > { %1351 = vmatpush.msra.mxu1 %v1279_v37 }
 0x4c6   : > { %v1107_v10 = vpop.f32.mrf.mxu0  ;;  %v1131_v13 = vpop.f32.mrf.mxu1 }
 0x4c7   : > { %v1108_v16 = vadd.f32 %v1710_v9, %v1107_v10  ;;  %v1132_v17 = vadd.f32 %v1710_v9, %v1131_v13 }
 0x4c9   : > { %v1110_v18 = vmax.f32 %v1108_v16, 0.0  ;;  %v1134_v14 = vmax.f32 %v1132_v17, 0.0 }
 0x4cb   : > { %v1135_v20 = vmax.f32 %v1110_v18, %v1134_v14 }
 0x4cd   : > { %1597 = vmatmul.msk.f32.vlgmr.msra.gmra.mxu2 %vm1149_vm4, %v1135_v20  ;;  %v1148_v21 = vrot.slane %v1135_v20, 1  ;;  %v1194_v22 = vrot.slane %v1135_v20, 2  ;;  %v1218_v19 = vrot.slane %v1135_v20, 3  ;;  %v1242_v23 = vrot.slane %v1135_v20, 4 }
 0x4ce   : > { %1404 = vmatpush.msra.mxu2 %v1387_v48 }
 0x4cf   : > { %1596 = vmatmul.msk.f32.vlgmr.msra.gmra.mxu3 %vm1149_vm4, %v1148_v21  ;;  %1598 = vmatmul.msk.f32.vlgmr.msrb.gmra.mxu0 %vm1149_vm4, %v1194_v22 }
 0x4d0   : > { %1599 = vmatmul.msk.f32.vlgmr.msrb.gmra.mxu1 %vm1149_vm4, %v1218_v19  ;;  %1372 = vmatpush.msra.mxu3 %v1286_v27 }
 0x4d1   : > { %1405 = vmatpush.msra.mxu2 %v1386_v49 }
 0x4d2   : > { %1373 = vmatpush.msra.mxu3 %v1285_v31 }
 0x4d3   : > { %1406 = vmatpush.msra.mxu2 %v1385_v50 }
 0x4d4   : > { %1374 = vmatpush.msra.mxu3 %v1284_v35 }
 0x4d5   : > { %1407 = vmatpush.msra.mxu2 %v1384_v51 }
 0x4d6   : > { %1375 = vmatpush.msra.mxu3 %v1283_v38 }
 0x4d7   : > { %1600 = vmatmul.msk.f32.vlgmr.msrb.gmra.mxu3 %vm1149_vm4, %v1242_v23 }
 0x54c   : > { %v1214_v41 = vpop.f32.mrf.mxu0 }
 0x54d   : > { %v1238_v43 = vpop.f32.mrf.mxu1 }
 0x550   : > { %v1191_v39 = vpop.f32.mrf.mxu2 }
 0x552   : > { %v1169_v15 = vpop.f32.mrf.mxu3 }
 0x553   : > { %v1192_v40 = vadd.f32 %v1191_v39, %v1169_v15 }
 0x555   : > { %v1217_v42 = vadd.f32 %v1214_v41, %v1192_v40 }
 0x557   : > { %v1241_v44 = vadd.f32 %v1238_v43, %v1217_v42 }
 0x55a   : > { %v1262_v11 = vpop.f32.mrf.mxu3 }
 0x55b   : > { %v1265_v45 = vadd.f32 %v1262_v11, %v1241_v44 }
 0x55d   : > { %v1269_v5 = vadd.f32 %v1711_v7, %v1265_v45 }
 0x55f   : > { %v1270_v3 = vmax.f32 %v1269_v5, 0.0 }
 0x561   : > { %v1288_v4 = vrot.slane %v1270_v3, 1  ;;  %v1333_v46 = vrot.slane %v1270_v3, 2  ;;  %v1357_v47 = vrot.slane %v1270_v3, 3  ;;  %1602 = vmatmul.msk.f32.vlgmr.msra.gmra.mxu0 %vm2438_vm5, %v1270_v3 }
 0x563   : > { %1601 = vmatmul.msk.f32.vlgmr.msrb.gmra.mxu2 %vm2439_vm3, %v1288_v4  ;;  %1603 = vmatmul.msk.f32.vlgmr.msra.gmra.mxu1 %vm2440_vm6, %v1333_v46 }
 0x564   : > { %1604 = vmatmul.msk.f32.vlgmr.msra.gmra.mxu3 %vm2441_vm7, %v1357_v47 }
 0x5de   : > { %v1330_v52 = vpop.f32.mrf.mxu0 }
 0x5e0   : > { %v1353_v55 = vpop.f32.mrf.mxu1 }
 0x5e6   : > { %v1308_v53 = vpop.f32.mrf.mxu2 }
 0x5e7   : > { %v1331_v54 = vadd.f32 %v1330_v52, %v1308_v53  ;;  %v1377_v57 = vpop.f32.mrf.mxu3 }
 0x5e9   : > { %v1356_v56 = vadd.f32 %v1353_v55, %v1331_v54 }
 0x5eb   : > { %v1380_v59 = vadd.f32 %v1377_v57, %v1356_v56 }
 0x5ed   : > { %v1382_v60 = vadd.f32 %v1381_v58, %v1380_v59 }
 0x5ef   : > { %v1383_v61 = vmax.f32 %v1382_v60, 0.0 }
 0x5f1   : > { %1605 = vmatmul.msk.f32.vlgmr.msra.gmra.mxu2 %vm2442_vm8, %v1383_v61 }
 0x674   : > { %v1409_v2 = vpop.f32.mrf.mxu2 }
 0x675   : > { %v1410_v63 = vadd.f32 %v1409_v2, %v1388_v62 }
 0x677   : > { %1413 = vst.msk [vmem:[%s613_s6] sm:$0x1] %vm1412_vm9, %v1410_v63 }
 0x678   : > { %1913 = shalt.err (!%p1910_p8)
}
 0x679   : > { %1629 = dma.vmem_to_hbm [thread:$0]  (%p2097_p5), %s1426_s28, 16, %s1428_s22, %s1415_s10  }
 0x67a PF: > { %s2445_s0 = sld [smem:[#allocation19_spill]] }
 0x67b   : > { %s2446_s18 = sld [smem:[#allocation17_spill]] }
 0x680   : > { %p1661_p9 = scmp.ge.s32.totalorder %s2445_s0, 2 }
 0x681   : > { %s1439_s20 = sand.u32 1, %s2446_s18  }
 0x682   : > { %p1648_p10 = pnand %p1661_p9, %p2101_p6  ;;  %s1440_s21 = scalar_lea.sflag [#allocation5], %s1439_s20 }
 0x684   : > { %p1649_p11 = pneg %p1648_p10 }
 0x686   : > { %1943 = dma.done.wait (%p1649_p11), %s1440_s21, 16  }
 0x687   : > { %1945 = vsyncadd (%p1649_p11), %s1440_s21, 4294967280  ;;  %s2448_s26 = sld [smem:[#allocation20_spill]]  ;;  %s2451_s23 = smov %s1952_s24 }
 0x688   : > { %s2449_s27 = sld [smem:[#allocation18_spill]] }
 0x689   : > { %s2450_s25 = sld [smem:[#allocation21_spill]] }
 0x68d   : > { %p31_p12 = scmp.ge.s32.totalorder %s2448_s26, 4  }
 0x68e   : > { %s2452_s24 = smov %s2449_s27 }
 0x68f   :  { %33 = sbr.rel (!%p31_p12) target bundleno = 11 (0xb), region = 143 }
 0x694   :  { %1445 = vsyncpa [#allocation4], 1 }
 0x695   :  { %1447 = vsyncpa [#allocation4 + $0x1], 1 }
 0x696   :  { %1448 = vsyncpa [#allocation7], 1 }
 0x697   :  { %1449 = vsyncpa [#allocation10], 1 }
 0x698   :  { %1450 = vsyncpa [#allocation5], 1 }
 0x699   :  { %1452 = vsyncpa [#allocation5 + $0x1], 1 }

</bundles_post_ra>
